<compile_context>
chip_gen: v7x
topology: tpu7x:2x2x1
jax: 0.10.0
libtpu: 0.0.40
codegen_flags: <defaults>
</compile_context>

<pallas_src>
import jax
import jax.numpy as jnp
from jax.experimental import pallas as pl
from jax.experimental.pallas import tpu as pltpu

HID1, HID2 = 256, 128
LANE = 128
SUB = 16  # sublane rounding for bf16 tiles


def _round_up(x, m):
    return ((x + m - 1) // m) * m


def qnet_kernel(x_ref, w1_ref, b1_ref, w2_ref, b2_ref, w3_ref, b3_ref, o_ref):
    # Layer 1: (TB, S)bf16 @ (S, 256)bf16 -> f32 accumulate; bias + ReLU in f32.
    h1 = jnp.dot(x_ref[...], w1_ref[...], preferred_element_type=jnp.float32)
    h1 = jnp.maximum(h1 + b1_ref[...], 0.0)
    # Layer 2: (TB, 256) @ (256, 128); cast activation to bf16 only at the dot.
    h2 = jnp.dot(h1.astype(jnp.bfloat16), w2_ref[...],
                 preferred_element_type=jnp.float32)
    h2 = jnp.maximum(h2 + b2_ref[...], 0.0)
    # Layer 3: (TB, 128) @ (128, A_pad); lane-dense padded output, no activation.
    out = jnp.dot(h2.astype(jnp.bfloat16), w3_ref[...],
                  preferred_element_type=jnp.float32)
    # bf16 store: halves the HBM output stream (bias add stays in f32).
    o_ref[...] = (out + b3_ref[...]).astype(o_ref.dtype)


def prepare_params(params):
    """One-time parameter prep (keep out of the per-call hot path).

    - normalizes biases to shape (1, N) (handles 1-D state_dict biases),
    - zero-pads fc3 to a multiple of 128 output lanes (lane-dense store),
    - casts matmul operands to bf16, biases stay f32.
    """
    w1, b1, w2, b2, w3, b3 = params
    b1 = jnp.asarray(b1, jnp.float32).reshape(1, -1)
    b2 = jnp.asarray(b2, jnp.float32).reshape(1, -1)
    b3 = jnp.asarray(b3, jnp.float32).reshape(1, -1)

    A = w3.shape[1]
    A_pad = _round_up(A, LANE)
    w3p = jnp.zeros((HID2, A_pad), jnp.float32).at[:, :A].set(
        jnp.asarray(w3, jnp.float32))
    b3p = jnp.zeros((1, A_pad), jnp.float32).at[:, :A].set(b3)

    return {
        "w1": jnp.asarray(w1, jnp.bfloat16),
        "b1": b1,
        "w2": jnp.asarray(w2, jnp.bfloat16),
        "b2": b2,
        "w3": w3p.astype(jnp.bfloat16),
        "b3": b3p,
        "action_size": A,
    }


def qnet_forward(x, prepared, tb=2048):
    w1, b1 = prepared["w1"], prepared["b1"]
    w2, b2 = prepared["w2"], prepared["b2"]
    w3, b3 = prepared["w3"], prepared["b3"]
    A = prepared["action_size"]
    A_pad = w3.shape[1]
    B, S = x.shape

    # --- Tile selection ---------------------------------------------------
    # Cap tb at 8192 so the fused body (f32 h1/h2 scratch + bf16 I/O tiles)
    # stays well inside v7x's 64 MiB VMEM; grid-count-based TB bounds batch
    # padding to <16 rows per tile; force >=2 tiles for medium/large batches
    # so the "parallel" grid axis can shard across v7x's two TensorCores.
    tb = max(SUB, min(int(tb), 8192))
    num_tiles = pl.cdiv(B, tb)
    if num_tiles == 1 and B >= 256:
        num_tiles = 2
    TB = _round_up(pl.cdiv(B, num_tiles), SUB)
    B_pad = num_tiles * TB

    xb = x.astype(jnp.bfloat16)
    if B_pad != B:
        xb = jnp.zeros((B_pad, S), jnp.bfloat16).at[:B, :].set(xb)

    def const(shape):
        # Constant index_map -> DMA'd once, VMEM-resident across batch tiles.
        return pl.BlockSpec(shape, lambda i: (0,) * len(shape))

    flops = 2 * B_pad * (S * HID1 + HID1 * HID2 + HID2 * A_pad)
    bytes_accessed = (xb.size * 2
                      + (w1.size + w2.size + w3.size) * 2
                      + (b1.size + b2.size + b3.size) * 4
                      + B_pad * A_pad * 2)

    out = pl.pallas_call(
        qnet_kernel,
        out_shape=jax.ShapeDtypeStruct((B_pad, A_pad), jnp.bfloat16),
        grid=(num_tiles,),
        in_specs=[
            pl.BlockSpec((TB, S), lambda i: (i, 0)),   # x: streamed per batch tile
            const(w1.shape), const(b1.shape),          # weights/biases: resident
            const(w2.shape), const(b2.shape),
            const(w3.shape), const(b3.shape),
        ],
        out_specs=pl.BlockSpec((TB, A_pad), lambda i: (i, 0)),
        compiler_params=pltpu.CompilerParams(
            dimension_semantics=("parallel",),
            vmem_limit_bytes=48 * 1024 * 1024),
        cost_estimate=pl.CostEstimate(
            flops=flops, transcendentals=0, bytes_accessed=bytes_accessed),
    )(xb, w1, b1, w2, b2, w3, b3)

    # Tiny (B, A) slice; upcast to f32 outside the kernel so the dominant
    # HBM output stream stays bf16.
    # TODO(synk): for a pure act() path, fuse argmax over actions into the
    # kernel epilogue so only (TB, 1) ever leaves VMEM.
    return out[:B, :A].astype(jnp.float32)


def init_params(key, state_size, action_size):
    """Deterministic init mimicking nn.Linear's U(-1/sqrt(in), 1/sqrt(in))."""
    def linear(k, fan_in, fan_out):
        kw, kb = jax.random.split(k)
        bound = 1.0 / jnp.sqrt(jnp.float32(fan_in))
        w = jax.random.uniform(kw, (fan_in, fan_out), jnp.float32, -bound, bound)
        b = jax.random.uniform(kb, (1, fan_out), jnp.float32, -bound, bound)
        return w, b

    k1, k2, k3 = jax.random.split(key, 3)
    w1, b1 = linear(k1, state_size, HID1)
    w2, b2 = linear(k2, HID1, HID2)
    w3, b3 = linear(k3, HID2, action_size)
    return w1, b1, w2, b2, w3, b3


def qnet_reference(x, params):
    w1, b1, w2, b2, w3, b3 = params
    h1 = jnp.maximum(x @ w1 + b1, 0.0)
    h2 = jnp.maximum(h1 @ w2 + b2, 0.0)
    return h2 @ w3 + b3


if __name__ == "__main__":
    state_size = 8
    action_size = 4
    batch = 8

    key = jax.random.PRNGKey(0)
    kx, kp = jax.random.split(key)
    x = jax.random.normal(kx, (batch, state_size), jnp.float32)
    params = init_params(kp, state_size, action_size)

    prepared = prepare_params(params)          # one-time prep, off the hot path
    out = qnet_forward(x, prepared)
    out = jax.block_until_ready(out)

    ref = qnet_reference(x, params)
    assert out.shape == (batch, action_size)
    assert out.dtype == jnp.float32
    # bf16 matmul operands + bf16 output store with f32 accumulation ->
    # loosened tolerance vs the f32 reference (explicit accuracy decision).
    assert jnp.allclose(out, ref, atol=3e-2, rtol=3e-2), "mismatch vs reference"

    print("KERNEL_OK")
</pallas_src>

<mosaic_0001>
module attributes {stable_mosaic.version = 11 : i64} {
  func.func @qnet_kernel(%arg0: i32, %arg1: memref<16x8xbf16, #tpu.memory_space<vmem>>, %arg2: memref<8x256xbf16, #tpu.memory_space<vmem>>, %arg3: memref<1x256xf32, #tpu.memory_space<vmem>>, %arg4: memref<256x128xbf16, #tpu.memory_space<vmem>>, %arg5: memref<1x128xf32, #tpu.memory_space<vmem>>, %arg6: memref<128x128xbf16, #tpu.memory_space<vmem>>, %arg7: memref<1x128xf32, #tpu.memory_space<vmem>>, %arg8: memref<16x128xbf16, #tpu.memory_space<vmem>>) attributes {dimension_semantics = [#tpu.dimension_semantics<parallel>], iteration_bounds = array<i64: 1>, scalar_prefetch = 0 : i64, scratch_operands = 0 : i64, tpu.core_type = #tpu.core_type<tc>, window_params = [{transform_indices = @transform_0, window_bounds = array<i64: 16, 8>}, {pipeline_mode = #tpu.pipeline_mode<synchronous>, transform_indices = @transform_1, window_bounds = array<i64: 8, 256>}, {pipeline_mode = #tpu.pipeline_mode<synchronous>, transform_indices = @transform_2, window_bounds = array<i64: 1, 256>}, {pipeline_mode = #tpu.pipeline_mode<synchronous>, transform_indices = @transform_3, window_bounds = array<i64: 256, 128>}, {pipeline_mode = #tpu.pipeline_mode<synchronous>, transform_indices = @transform_4, window_bounds = array<i64: 1, 128>}, {pipeline_mode = #tpu.pipeline_mode<synchronous>, transform_indices = @transform_5, window_bounds = array<i64: 128, 128>}, {pipeline_mode = #tpu.pipeline_mode<synchronous>, transform_indices = @transform_6, window_bounds = array<i64: 1, 128>}, {transform_indices = @transform_7, window_bounds = array<i64: 16, 128>}]} {
    %c0 = arith.constant 0 : index
    %c0_0 = arith.constant 0 : index
    %0 = vector.load %arg1[%c0, %c0_0] : memref<16x8xbf16, #tpu.memory_space<vmem>>, vector<16x8xbf16>
    %c0_1 = arith.constant 0 : index
    %c0_2 = arith.constant 0 : index
    %1 = vector.load %arg2[%c0_1, %c0_2] : memref<8x256xbf16, #tpu.memory_space<vmem>>, vector<8x256xbf16>
    %cst = arith.constant dense<0.000000e+00> : vector<16x256xf32>
    %2 = tpu.matmul %0, %1, %cst {dimension_numbers = #tpu.dot_dimension_numbers<[1], [0], [0], [1], [0, 0, 1, 1], [], []>} : vector<16x8xbf16>, vector<8x256xbf16>, vector<16x256xf32> -> vector<16x256xf32>
    %c0_3 = arith.constant 0 : index
    %c0_4 = arith.constant 0 : index
    %3 = vector.load %arg3[%c0_3, %c0_4] : memref<1x256xf32, #tpu.memory_space<vmem>>, vector<1x256xf32>
    %4 = vector.broadcast %3 : vector<1x256xf32> to vector<16x256xf32>
    %5 = arith.addf %2, %4 : vector<16x256xf32>
    %cst_5 = arith.constant 0.000000e+00 : f32
    %6 = vector.broadcast %cst_5 : f32 to vector<16x256xf32>
    %7 = arith.maximumf %5, %6 : vector<16x256xf32>
    %8 = arith.truncf %7 : vector<16x256xf32> to vector<16x256xbf16>
    %c0_6 = arith.constant 0 : index
    %c0_7 = arith.constant 0 : index
    %9 = vector.load %arg4[%c0_6, %c0_7] : memref<256x128xbf16, #tpu.memory_space<vmem>>, vector<256x128xbf16>
    %cst_8 = arith.constant dense<0.000000e+00> : vector<16x128xf32>
    %10 = tpu.matmul %8, %9, %cst_8 {dimension_numbers = #tpu.dot_dimension_numbers<[1], [0], [0], [1], [0, 0, 1, 1], [], []>} : vector<16x256xbf16>, vector<256x128xbf16>, vector<16x128xf32> -> vector<16x128xf32>
    %c0_9 = arith.constant 0 : index
    %c0_10 = arith.constant 0 : index
    %11 = vector.load %arg5[%c0_9, %c0_10] : memref<1x128xf32, #tpu.memory_space<vmem>>, vector<1x128xf32>
    %12 = vector.broadcast %11 : vector<1x128xf32> to vector<16x128xf32>
    %13 = arith.addf %10, %12 : vector<16x128xf32>
    %cst_11 = arith.constant 0.000000e+00 : f32
    %14 = vector.broadcast %cst_11 : f32 to vector<16x128xf32>
    %15 = arith.maximumf %13, %14 : vector<16x128xf32>
    %16 = arith.truncf %15 : vector<16x128xf32> to vector<16x128xbf16>
    %c0_12 = arith.constant 0 : index
    %c0_13 = arith.constant 0 : index
    %17 = vector.load %arg6[%c0_12, %c0_13] : memref<128x128xbf16, #tpu.memory_space<vmem>>, vector<128x128xbf16>
    %cst_14 = arith.constant dense<0.000000e+00> : vector<16x128xf32>
    %18 = tpu.matmul %16, %17, %cst_14 {dimension_numbers = #tpu.dot_dimension_numbers<[1], [0], [0], [1], [0, 0, 1, 1], [], []>} : vector<16x128xbf16>, vector<128x128xbf16>, vector<16x128xf32> -> vector<16x128xf32>
    %c0_15 = arith.constant 0 : index
    %c0_16 = arith.constant 0 : index
    %19 = vector.load %arg7[%c0_15, %c0_16] : memref<1x128xf32, #tpu.memory_space<vmem>>, vector<1x128xf32>
    %20 = vector.broadcast %19 : vector<1x128xf32> to vector<16x128xf32>
    %21 = arith.addf %18, %20 : vector<16x128xf32>
    %22 = arith.truncf %21 : vector<16x128xf32> to vector<16x128xbf16>
    %c0_17 = arith.constant 0 : index
    %c0_18 = arith.constant 0 : index
    %23 = vector.load %arg8[%c0_17, %c0_18] : memref<16x128xbf16, #tpu.memory_space<vmem>>, vector<16x128xbf16>
    tpu.vector_store %arg8[%c0_17, %c0_18], %22 {strides = array<i32>} : memref<16x128xbf16, #tpu.memory_space<vmem>>, vector<16x128xbf16>,
    return
  }
  func.func @transform_0(%arg0: i32) -> (i32, i32) {
    %c0_i32 = arith.constant 0 : i32
    %c0_i32_0 = arith.constant 0 : i32
    return %arg0, %c0_i32 : i32, i32
  }
  func.func @transform_1(%arg0: i32) -> (i32, i32) {
    %c0_i32 = arith.constant 0 : i32
    %c0_i32_0 = arith.constant 0 : i32
    %c0_i32_1 = arith.constant 0 : i32
    return %c0_i32, %c0_i32_0 : i32, i32
  }
  func.func @transform_2(%arg0: i32) -> (i32, i32) {
    %c0_i32 = arith.constant 0 : i32
    %c0_i32_0 = arith.constant 0 : i32
    %c0_i32_1 = arith.constant 0 : i32
    return %c0_i32, %c0_i32_0 : i32, i32
  }
  func.func @transform_3(%arg0: i32) -> (i32, i32) {
    %c0_i32 = arith.constant 0 : i32
    %c0_i32_0 = arith.constant 0 : i32
    %c0_i32_1 = arith.constant 0 : i32
    return %c0_i32, %c0_i32_0 : i32, i32
  }
  func.func @transform_4(%arg0: i32) -> (i32, i32) {
    %c0_i32 = arith.constant 0 : i32
    %c0_i32_0 = arith.constant 0 : i32
    %c0_i32_1 = arith.constant 0 : i32
    return %c0_i32, %c0_i32_0 : i32, i32
  }
  func.func @transform_5(%arg0: i32) -> (i32, i32) {
    %c0_i32 = arith.constant 0 : i32
    %c0_i32_0 = arith.constant 0 : i32
    %c0_i32_1 = arith.constant 0 : i32
    return %c0_i32, %c0_i32_0 : i32, i32
  }
  func.func @transform_6(%arg0: i32) -> (i32, i32) {
    %c0_i32 = arith.constant 0 : i32
    %c0_i32_0 = arith.constant 0 : i32
    %c0_i32_1 = arith.constant 0 : i32
    return %c0_i32, %c0_i32_0 : i32, i32
  }
  func.func @transform_7(%arg0: i32) -> (i32, i32) {
    %c0_i32 = arith.constant 0 : i32
    %c0_i32_0 = arith.constant 0 : i32
    return %arg0, %c0_i32 : i32, i32
  }
}

</mosaic_0001>

<bundles_post_ra>
// kernel: tpu_custom_call.1
= control target key start
LH: loop header
LB: loop body
LE: loop exit
PB: predicated region body
PF: predicated region fallthrough
CT: control target
= control target key end

     0   :  { %12 = vsyncpa [#allocation3], 0  ;;  %s766_s0 = inlined_call_operand.vmem [shape: bf16[16,8], index: 0, kind: input, shape index: {}]   ;;  %s767_s1 = inlined_call_operand.vmem [shape: bf16[8,256], index: 1, kind: input, shape index: {}]   ;;  %s768_s2 = inlined_call_operand.vmem [shape: f32[1,256], index: 2, kind: input, shape index: {}]   ;;  %s769_s3 = inlined_call_operand.hbm [shape: bf16[256,128], index: 3, kind: input, shape index: {}]   ;;  %s770_s4 = inlined_call_operand.vmem [shape: f32[1,128], index: 4, kind: input, shape index: {}]   ;;  %s771_s5 = inlined_call_operand.hbm [shape: bf16[128,128], index: 5, kind: input, shape index: {}]   ;;  %s772_s6 = inlined_call_operand.vmem [shape: f32[1,128], index: 6, kind: input, shape index: {}]   ;;  %s773_s7 = inlined_call_operand.hbm [shape: bf16[16,128], index: 7, kind: output, shape index: {}]  }
   0x1   :  { %13 = vsyncpa [#allocation6], 0 }
   0x2   :  { %14 = vsyncpa [#allocation4], 0  ;;  %s658_s24 = smov [#allocation2]   ;;  %s586_s28 = scalar_lea.hbm %s769_s3, 2048 }
   0x3   :  { %s26_s25 = sshll.u32 %s658_s24, 4  ;;  %p587_p0 = scmp.ne.s32.totalorder %s769_s3, %s586_s28  ;;  %s27_s25 = int_to_ptr.vmem [resolvable:$true] %s26_s25 }
   0x4   :  { %p590_p1 = scmp.lt.u32.totalorder %s586_s28, %s769_s3 }
   0x6   :  { %p592_p2 = pnand %p590_p1, %p587_p0 }
   0x8   :  { %595 = shalt.err (!%p592_p2)
}
   0x9   :  { %s596_s10 = scalar_lea.vmem %s27_s25, 2048  ;;  %p601_p4 = scmp.lt.s32.totalorder %s27_s25, %s27_s25 }
   0xa   :  { %p597_p3 = scmp.ne.s32.totalorder %s27_s25, %s596_s10  ;;  %p602_p5 = scmp.lt.s32.totalorder %s596_s10, %s596_s10 }
   0xc   :  { %p603_p6 = por %p602_p5, %p601_p4 }
   0xe   :  { %p604_p7 = pnand %p603_p6, %p597_p3 }
  0x10   :  { %607 = shalt.err (!%p604_p7)
}
  0x11   :  { %s659_s11 = smov 64   ;;  %s660_s12 = smov 4  }
  0x12   :  { %32 = dma.hbm_to_vmem [thread:$0]  %s769_s3, 2048, %s27_s25, [#allocation3], %s659_s11, %s659_s11, %s660_s12  }
  0x13   :  { %s661_s15 = smov [#allocation5]   ;;  %s608_s19 = scalar_lea.hbm %s771_s5, 1024 }
  0x14   :  { %s40_s16 = sshll.u32 %s661_s15, 4  ;;  %p609_p8 = scmp.ne.s32.totalorder %s771_s5, %s608_s19  ;;  %s41_s16 = int_to_ptr.vmem [resolvable:$true] %s40_s16 }
  0x15   :  { %p612_p9 = scmp.lt.u32.totalorder %s608_s19, %s771_s5 }
  0x17   :  { %p614_p10 = pnand %p612_p9, %p609_p8 }
  0x19   :  { %617 = shalt.err (!%p614_p10)
}
  0x1a   :  { %s618_s24 = scalar_lea.vmem %s41_s16, 1024  ;;  %p623_p12 = scmp.lt.s32.totalorder %s41_s16, %s41_s16 }
  0x1b   :  { %p619_p11 = scmp.ne.s32.totalorder %s41_s16, %s618_s24  ;;  %p624_p13 = scmp.lt.s32.totalorder %s618_s24, %s618_s24 }
  0x1d   :  { %p625_p0 = por %p624_p13, %p623_p12 }
  0x1f   :  { %p626_p1 = pnand %p625_p0, %p619_p11 }
  0x21   :  { %629 = shalt.err (!%p626_p1)
}
  0x22   :  { %46 = dma.hbm_to_vmem [thread:$0]  %s771_s5, 1024, %s41_s16, [#allocation6], %s659_s11, %s659_s11, %s660_s12  }
  0x23   :  { %652 = dma.done.wait [#allocation3], 2048  }
  0x24   :  { %653 = vsyncadd [#allocation3], 4294965248 }
  0x25   :  { %654 = dma.done.wait [#allocation6], 1024  }
  0x26   :  { %655 = vsyncadd [#allocation6], 4294966272  ;;  %v662_v0 = vmov 0   ;;  %v58_v1 = vld [vmem:[%s767_s1] sm:$0xff]  ;;  %vm85_vm0 = vcmask 1043456   ;;  %v562_v5 = vld [vmem:[#allocation2 + $0x40] sm:$0xff]   ;;  %v61_v28 = vlaneseq }
  0x27   :  { %124 = vmatprep.mubr.bf16.mxu0 %v662_v0  ;;  %v462_v2 = vcombine.high %v58_v1, %v58_v1  ;;  %v461_v3 = vcombine.low %v58_v1, %v58_v1  ;;  %v561_v4 = vld [vmem:[%s766_s0] sm:$0xff]   ;;  %v563_v7 = vld [vmem:[#allocation2] sm:$0xff]   ;;  %vm81_vm1 = vcmask 64512   ;;  %500 = vmatprep.subr.bf16.mxu1 %v562_v5  ;;  %v564_v8 = vld [vmem:[#allocation2 + $0x48] sm:$0xff]   ;;  %v663_v23 = vmov 0.0   ;;  %s665_s9 = smov [#allocation7]  }
  0x28   :  { %501 = vmatpush3.bf16.msra.mxu1 %v563_v7  ;;  %v565_v9 = vld [vmem:[#allocation2 + $0x8] sm:$0xff]   ;;  %v566_v10 = vld [vmem:[#allocation2 + $0x50] sm:$0xff]   ;;  %v568_v12 = vld [vmem:[#allocation2 + $0x58] sm:$0xff]   ;;  %v62_v29 = vshrl.u32 %v61_v28, 7  ;;  %vm664_vm2 = vmmov 0  }
  0x29   :  { %463 = vmatprep.subr.msk.bf16.mxu0 %vm85_vm0, %v462_v2  ;;  %v87_v6 = vsel %vm85_vm0, %v461_v3, 0  ;;  %502 = vmatprep.subr.bf16.mxu1 %v564_v8  ;;  %v567_v11 = vld [vmem:[#allocation2 + $0x10] sm:$0xff]   ;;  %v569_v13 = vld [vmem:[#allocation2 + $0x18] sm:$0xff]   ;;  %v570_v14 = vld [vmem:[#allocation2 + $0x60] sm:$0xff]  }
  0x2a   :  { %93 = vmatpush1.bf16.msra.mxu0 %v87_v6  ;;  %v571_v15 = vld [vmem:[#allocation2 + $0x20] sm:$0xff]   ;;  %v572_v16 = vld [vmem:[#allocation2 + $0x68] sm:$0xff]   ;;  %v574_v18 = vld [vmem:[#allocation2 + $0x70] sm:$0xff]   ;;  %v63_v30 = vsub.s32 0, %v62_v29  ;;  %v67_v32 = vsub.s32 1, %v62_v29 }
  0x2b   :  { %v573_v17 = vld [vmem:[#allocation2 + $0x28] sm:$0xff]   ;;  %v575_v19 = vld [vmem:[#allocation2 + $0x30] sm:$0xff]   ;;  %v576_v20 = vld [vmem:[#allocation2 + $0x78] sm:$0xff]   ;;  %531 = vmatprep.subr.bf16.mxu0 %v663_v23 }
  0x2c   :  { %503 = vmatpush3.bf16.msra.mxu1 %v565_v9  ;;  %v577_v21 = vld [vmem:[#allocation2 + $0x38] sm:$0xff]   ;;  %v578_v22 = vld [vmem:[#allocation5] sm:$0xff]   ;;  %v579_v24 = vld [vmem:[#allocation5 + $0x8] sm:$0xff]  }
  0x2d   :  { %464 = vmatmul.mubr.msk.bf16.vlgmr.msra.gmra.mrb[0].mxu0 %vm81_vm1, %v561_v4  ;;  %504 = vmatprep.subr.bf16.mxu1 %v566_v10  ;;  %v580_v25 = vld [vmem:[#allocation5 + $0x10] sm:$0xff]   ;;  %v581_v26 = vld [vmem:[#allocation5 + $0x18] sm:$0xff]   ;;  %v582_v27 = vld [vmem:[#allocation5 + $0x20] sm:$0xff]  }
  0x2e   :  { %532 = vmatpush3.bf16.msra.mxu0 %v578_v22  ;;  %v59_v31 = vld [vmem:[%s768_s2] sm:$0x3]  ;;  %v583_v49 = vld [vmem:[#allocation5 + $0x28] sm:$0xff]   ;;  %v584_v50 = vld [vmem:[#allocation5 + $0x30] sm:$0xff]   ;;  %547 = vmatprep.mubr.msk.bf16.mxu0 %vm664_vm2, %v663_v23 }
  0x2f   :  { %533 = vmatprep.subr.bf16.mxu0 %v663_v23  ;;  %v64_v33 = vrot.slane %v59_v31, %v63_v30  ;;  %v68_v34 = vrot.slane %v59_v31, %v67_v32  ;;  %v585_v51 = vld [vmem:[#allocation5 + $0x38] sm:$0xff]  }
  0x30   :  { %505 = vmatpush3.bf16.msra.mxu1 %v567_v11  ;;  %v465_v53 = vld [vmem:[%s770_s4] ss:$0 sm:$0xff]  ;;  %s447_s4 = sshll.u32 %s665_s9, 4  ;;  %s448_s4 = int_to_ptr.vmem [resolvable:$true] %s447_s4 }
  0x31   :  { %506 = vmatprep.subr.bf16.mxu1 %v568_v12  ;;  %v482_v0 = vld [vmem:[%s772_s6] ss:$0 sm:$0xff]  ;;  %s630_s10 = scalar_lea.vmem %s448_s4, 128  ;;  %p635_p3 = scmp.lt.s32.totalorder %s448_s4, %s448_s4 }
  0x32   :  { %534 = vmatpush3.bf16.msra.mxu0 %v579_v24  ;;  %p631_p2 = scmp.ne.s32.totalorder %s448_s4, %s630_s10  ;;  %p636_p4 = scmp.lt.s32.totalorder %s630_s10, %s630_s10 }
  0x33   :  { %535 = vmatprep.subr.bf16.mxu0 %v663_v23 }
  0x34   :  { %507 = vmatpush3.bf16.msra.mxu1 %v569_v13  ;;  %p637_p5 = por %p636_p4, %p635_p3 }
  0x35   :  { %508 = vmatprep.subr.bf16.mxu1 %v570_v14 }
  0x36   :  { %536 = vmatpush3.bf16.msra.mxu0 %v580_v25  ;;  %p638_p6 = pnand %p637_p5, %p631_p2 }
  0x37   :  { %537 = vmatprep.subr.bf16.mxu0 %v663_v23 }
  0x38   :  { %509 = vmatpush3.bf16.msra.mxu1 %v571_v15 }
  0x39   :  { %510 = vmatprep.subr.bf16.mxu1 %v572_v16 }
  0x3a   :  { %538 = vmatpush3.bf16.msra.mxu0 %v581_v26 }
  0x3b   :  { %539 = vmatprep.subr.bf16.mxu0 %v663_v23 }
  0x3c   :  { %511 = vmatpush3.bf16.msra.mxu1 %v573_v17 }
  0x3d   :  { %512 = vmatprep.subr.bf16.mxu1 %v574_v18 }
  0x3e   :  { %540 = vmatpush3.bf16.msra.mxu0 %v582_v27 }
  0x3f   :  { %541 = vmatprep.subr.bf16.mxu0 %v663_v23 }
  0x40   :  { %513 = vmatpush3.bf16.msra.mxu1 %v575_v19 }
  0x41   :  { %514 = vmatprep.subr.bf16.mxu1 %v576_v20 }
  0x42   :  { %542 = vmatpush3.bf16.msra.mxu0 %v583_v49 }
  0x43   :  { %543 = vmatprep.subr.bf16.mxu0 %v663_v23 }
  0x44   :  { %515 = vmatpush3.bf16.msra.mxu1 %v577_v21 }
  0x46   :  { %544 = vmatpush3.bf16.msra.mxu0 %v584_v50 }
  0x47   :  { %545 = vmatprep.subr.bf16.mxu0 %v663_v23 }
  0x4a   :  { %546 = vmatpush3.bf16.msra.mxu0 %v585_v51 }
 0x100   :  { %v126_v35 = vpop.f32.mrb[0].mxu0 }
 0x101   :  { %v127_v36 = vadd.f32 %v126_v35, %v64_v33  ;;  %v128_v37 = vpop.f32.mrb[1].mxu0 }
 0x102   :  { %v129_v38 = vadd.f32 %v128_v37, %v68_v34  ;;  %v130_v39 = vpop.f32.mrb[2].mxu0 }
 0x103   :  { %v131_v40 = vadd.f32 %v130_v39, %v64_v33  ;;  %v132_v41 = vpop.f32.mrb[3].mxu0  ;;  %v135_v43 = vmax.f32 %v127_v36, 0.0 }
 0x104   :  { %v133_v42 = vadd.f32 %v132_v41, %v68_v34  ;;  %v136_v45 = vmax.f32 %v129_v38, 0.0 }
 0x105   :  { %v137_v44 = vmax.f32 %v131_v40, 0.0 }
 0x106   :  { %v138_v46 = vmax.f32 %v133_v42, 0.0 }
 0x107   :  { %v139_v47 = vpack.c.bf16 %v137_v44, %v135_v43 }
 0x108   :  { %v140_v48 = vpack.c.bf16 %v138_v46, %v136_v45 }
 0x10a   :  { %308 = vmatprep.mubr.bf16.mxu1 %v140_v48 }
 0x10b   :  { %309 = vmatmul.mubr.bf16.vlgmr.msra.gmra.mrb[0].mxu1 %v139_v47 }
 0x1de   :  { %v516_v52 = vpop.f32.mrb[0].mxu1 }
 0x1df   :  { %v517_v54 = vpop.f32.mrb[1].mxu1 }
 0x1e0   :  { %v518_v55 = vadd.f32 %v517_v54, %v516_v52  ;;  %v519_v56 = vpop.f32.mrb[2].mxu1 }
 0x1e1   :  { %v520_v57 = vpop.f32.mrb[3].mxu1 }
 0x1e2   :  { %v311_v58 = vadd.f32 %v518_v55, %v465_v53  ;;  %v521_v59 = vadd.f32 %v520_v57, %v519_v56 }
 0x1e4   :  { %v314_v60 = vadd.f32 %v521_v59, %v465_v53  ;;  %v317_v61 = vmax.f32 %v311_v58, 0.0 }
 0x1e6   :  { %v318_v62 = vmax.f32 %v314_v60, 0.0 }
 0x1e8   :  { %v319_v63 = vpack.c.bf16 %v318_v62, %v317_v61 }
 0x1ea   :  { %548 = vmatmul.mubr.bf16.vlgmr.msra.gmra.mrb[4].mxu0 %v319_v63 }
 0x2bd   :  { %v425_v1 = vpop.f32.mrb[4].mxu0 }
 0x2be   :  { %v549_v2 = vpop.f32.mrb[5].mxu0  ;;  %v426_v4 = vadd.f32 %v482_v0, %v425_v1 }
 0x2bf   :  { %v428_v3 = vpop.f32.mrb[6].mxu0 }
 0x2c0   :  { %v429_v5 = vadd.f32 %v482_v0, %v428_v3  ;;  %v550_v6 = vpop.f32.mrb[7].mxu0 }
 0x2c2   :  { %v498_v7 = vpack.c.bf16 %v429_v5, %v426_v4 }
 0x2c4   :  { %499 = vst [vmem:[#allocation7] sm:$0xff] %v498_v7  }
 0x2c5   :  { %641 = shalt.err (!%p638_p6)
}
 0x2c6   :  { %s642_s14 = scalar_lea.hbm %s773_s7, 128 }
 0x2c7   :  { %p643_p7 = scmp.ne.s32.totalorder %s773_s7, %s642_s14  ;;  %p646_p8 = scmp.lt.u32.totalorder %s642_s14, %s773_s7 }
 0x2c9   :  { %p648_p9 = pnand %p646_p8, %p643_p7 }
 0x2cb   :  { %651 = shalt.err (!%p648_p9)
}
 0x2cc   :  { %453 = dma.vmem_to_hbm [thread:$0]  %s448_s4, 128, %s773_s7, [#allocation4], %s659_s11, %s659_s11, %s660_s12  }
 0x2cd   :  { %656 = dma.done.wait [#allocation4], 128  }
 0x2ce   :  { %657 = vsyncadd [#allocation4], 4294967168 }
 0x2cf   :  { %457 = vsyncpa [#allocation3], 1 }
 0x2d0   :  { %458 = vsyncpa [#allocation6], 1 }
 0x2d1   :  { %459 = vsyncpa [#allocation4], 1 }

</bundles_post_ra>
